<compile_context>
chip_gen: v5e
topology: v5e:2x2
jax: 0.10.0
libtpu: 0.0.40
codegen_flags: <defaults>
</compile_context>

<pallas_src>
import functools

import jax
import jax.numpy as jnp
from jax import lax
from jax.experimental import pallas as pl
from jax.experimental.pallas import tpu as pltpu

LOG_STD_MIN = -10.0
LOG_STD_MAX = 2.0


def _round_up(x, m):
    return ((x + m - 1) // m) * m


def gaussian_policy_kernel(x_ref, w1_ref, b1_ref, w2_ref, b2_ref, w3_ref, b3_ref,
                           out_ref, *, action_dim, log_std_min, log_std_max):
    cdt = w1_ref.dtype  # MXU compute dtype (bf16 by default); accumulation is f32

    # Layer 1: Linear + ReLU
    h1 = jnp.dot(x_ref[...].astype(cdt), w1_ref[...],
                 preferred_element_type=jnp.float32) + b1_ref[...]
    h1 = jnp.maximum(h1, 0.0)
    # Layer 2: Linear + ReLU
    h2 = jnp.dot(h1.astype(cdt), w2_ref[...],
                 preferred_element_type=jnp.float32) + b2_ref[...]
    h2 = jnp.maximum(h2, 0.0)
    # Head: Linear + tanh (final_activation='tanh'); f32 epilogue on all chips.
    out = jnp.dot(h2.astype(cdt), w3_ref[...],
                  preferred_element_type=jnp.float32) + b3_ref[...]
    out = jnp.tanh(out)

    # Fused epilogue on the full (TB, 2A) slab — no in-kernel lane slicing,
    # single combined store: lanes [0, A) hold mu, lanes [A, 2A) hold std.
    log_std = log_std_min + 0.5 * (log_std_max - log_std_min) * (out + 1.0)
    std = jnp.exp(log_std)
    lane = lax.broadcasted_iota(jnp.int32, out.shape, 1)
    out_ref[...] = jnp.where(lane < action_dim, out, std).astype(out_ref.dtype)


def gaussian_policy_forward(x, params, action_dim,
                            log_std_min=LOG_STD_MIN, log_std_max=LOG_STD_MAX,
                            *, block_b=512, compute_dtype=jnp.bfloat16):
    """Fused GaussianPolicy forward. Returns (mu, std) of the Normal distribution."""
    w1, b1, w2, b2, w3, b3 = params  # weights stored (in_dim, out_dim)
    B, S = x.shape
    H1 = w1.shape[1]
    H2 = w2.shape[1]
    OUT = w3.shape[1]
    assert OUT == 2 * action_dim

    # Lane-align the layer-1 K dimension (zero padding is exact).
    S_pad = _round_up(S, 128)
    if S_pad != S:
        x = jnp.pad(x, ((0, 0), (0, S_pad - S)))
        w1 = jnp.pad(w1, ((0, S_pad - S), (0, 0)))

    # Batch tile (multiple of 8 sublanes); pad B so every block is full.
    TB = min(block_b, _round_up(B, 8))
    B_pad = _round_up(B, TB)
    if B_pad != B:
        x = jnp.pad(x, ((0, B_pad - B), (0, 0)))
    grid = (B_pad // TB,)

    # bf16 weights for MXU peak throughput; biases stay f32 (added post-accum).
    w1c = w1.astype(compute_dtype)
    w2c = w2.astype(compute_dtype)
    w3c = w3.astype(compute_dtype)

    kernel = functools.partial(
        gaussian_policy_kernel,
        action_dim=action_dim,
        log_std_min=float(log_std_min),
        log_std_max=float(log_std_max),
    )

    wbytes = jnp.dtype(compute_dtype).itemsize
    cost = pl.CostEstimate(
        flops=2 * B_pad * (S_pad * H1 + H1 * H2 + H2 * OUT),
        transcendentals=2 * B_pad * OUT,
        bytes_accessed=(B_pad * S_pad * x.dtype.itemsize
                        + (S_pad * H1 + H1 * H2 + H2 * OUT) * wbytes
                        + (H1 + H2 + OUT) * 4
                        + B_pad * OUT * 4),
    )

    combined = pl.pallas_call(
        kernel,
        out_shape=jax.ShapeDtypeStruct((B_pad, OUT), jnp.float32),
        grid=grid,
        in_specs=[
            pl.BlockSpec((TB, S_pad), lambda i: (i, 0)),   # x: tiled over batch
            pl.BlockSpec((S_pad, H1), lambda i: (0, 0)),   # weights/biases: same
            pl.BlockSpec((1, H1),     lambda i: (0, 0)),   # block index every step
            pl.BlockSpec((H1, H2),    lambda i: (0, 0)),   # => stay resident, no
            pl.BlockSpec((1, H2),     lambda i: (0, 0)),   #    re-DMA across steps
            pl.BlockSpec((H2, OUT),   lambda i: (0, 0)),
            pl.BlockSpec((1, OUT),    lambda i: (0, 0)),
        ],
        out_specs=pl.BlockSpec((TB, OUT), lambda i: (i, 0)),  # single combined store
        compiler_params=pltpu.CompilerParams(
            dimension_semantics=("parallel",),                # megacore on v7x
        ),
        cost_estimate=cost,
    )(x, w1c, b1, w2c, b2, w3c, b3)

    mu = combined[:B, :action_dim]
    std = combined[:B, action_dim:]
    return mu, std


def init_params(key, state_dim, action_dim, hidden_dims=(256, 256)):
    """PyTorch nn.Linear default init: U(-1/sqrt(in), 1/sqrt(in)). Weights stored (in, out)."""
    dims = [state_dim] + list(hidden_dims) + [action_dim * 2]
    params = []
    for i in range(len(dims) - 1):
        key, kw, kb = jax.random.split(key, 3)
        bound = 1.0 / jnp.sqrt(dims[i])
        w = jax.random.uniform(kw, (dims[i], dims[i + 1]), jnp.float32, -bound, bound)
        b = jax.random.uniform(kb, (1, dims[i + 1]), jnp.float32, -bound, bound)
        params.extend([w, b])
    return tuple(params)


def reference_forward(x, params, action_dim,
                      log_std_min=LOG_STD_MIN, log_std_max=LOG_STD_MAX,
                      compute_dtype=jnp.bfloat16):
    """Pure-JAX reference with the same bf16-weight / f32-accum precision recipe."""
    w1, b1, w2, b2, w3, b3 = params
    dt = compute_dtype
    h = jnp.dot(x.astype(dt), w1.astype(dt), preferred_element_type=jnp.float32) + b1
    h = jnp.maximum(h, 0.0)
    h = jnp.dot(h.astype(dt), w2.astype(dt), preferred_element_type=jnp.float32) + b2
    h = jnp.maximum(h, 0.0)
    out = jnp.dot(h.astype(dt), w3.astype(dt), preferred_element_type=jnp.float32) + b3
    out = jnp.tanh(out)
    mu = out[:, :action_dim]
    log_std = out[:, action_dim:]
    log_std = log_std_min + 0.5 * (log_std_max - log_std_min) * (log_std + 1.0)
    return mu, jnp.exp(log_std)


if __name__ == "__main__":
    key = jax.random.PRNGKey(0)
    B, state_dim, action_dim = 2, 16, 4
    hidden_dims = (256, 256)

    key, kx = jax.random.split(key)
    x = jax.random.normal(kx, (B, state_dim), jnp.float32)
    params = init_params(key, state_dim, action_dim, hidden_dims)

    mu, std = gaussian_policy_forward(x, params, action_dim)
    mu = jax.block_until_ready(mu)
    std = jax.block_until_ready(std)

    mu_ref, std_ref = reference_forward(x, params, action_dim)
    assert mu.shape == (B, action_dim) and std.shape == (B, action_dim)
    assert jnp.allclose(mu, mu_ref, atol=1e-3, rtol=1e-3), "mu mismatch"
    assert jnp.allclose(std, std_ref, atol=1e-3, rtol=1e-3), "std mismatch"
    assert bool(jnp.all(std > 0.0)), "std must be positive"

    # TODO(synk): torch.distributions.Normal itself has no array equivalent;
    # the kernel returns its parameters (mu, std).
    print("KERNEL_OK")
</pallas_src>

<mosaic_0001>
module attributes {stable_mosaic.version = 11 : i64} {
  func.func @gaussian_policy_kernel(%arg0: i32, %arg1: memref<8x128xf32, #tpu.memory_space<vmem>>, %arg2: memref<128x256xbf16, #tpu.memory_space<vmem>>, %arg3: memref<1x256xf32, #tpu.memory_space<vmem>>, %arg4: memref<256x256xbf16, #tpu.memory_space<vmem>>, %arg5: memref<1x256xf32, #tpu.memory_space<vmem>>, %arg6: memref<256x8xbf16, #tpu.memory_space<vmem>>, %arg7: memref<1x8xf32, #tpu.memory_space<vmem>>, %arg8: memref<8x8xf32, #tpu.memory_space<vmem>>) attributes {dimension_semantics = [#tpu.dimension_semantics<parallel>], iteration_bounds = array<i64: 1>, scalar_prefetch = 0 : i64, scratch_operands = 0 : i64, tpu.core_type = #tpu.core_type<tc>, window_params = [{transform_indices = @transform_0, window_bounds = array<i64: 8, 128>}, {pipeline_mode = #tpu.pipeline_mode<synchronous>, transform_indices = @transform_1, window_bounds = array<i64: 128, 256>}, {pipeline_mode = #tpu.pipeline_mode<synchronous>, transform_indices = @transform_2, window_bounds = array<i64: 1, 256>}, {pipeline_mode = #tpu.pipeline_mode<synchronous>, transform_indices = @transform_3, window_bounds = array<i64: 256, 256>}, {pipeline_mode = #tpu.pipeline_mode<synchronous>, transform_indices = @transform_4, window_bounds = array<i64: 1, 256>}, {pipeline_mode = #tpu.pipeline_mode<synchronous>, transform_indices = @transform_5, window_bounds = array<i64: 256, 8>}, {pipeline_mode = #tpu.pipeline_mode<synchronous>, transform_indices = @transform_6, window_bounds = array<i64: 1, 8>}, {transform_indices = @transform_7, window_bounds = array<i64: 8, 8>}]} {
    %c0 = arith.constant 0 : index
    %c0_0 = arith.constant 0 : index
    %0 = vector.load %arg1[%c0, %c0_0] : memref<8x128xf32, #tpu.memory_space<vmem>>, vector<8x128xf32>
    %1 = arith.truncf %0 : vector<8x128xf32> to vector<8x128xbf16>
    %c0_1 = arith.constant 0 : index
    %c0_2 = arith.constant 0 : index
    %2 = vector.load %arg2[%c0_1, %c0_2] : memref<128x256xbf16, #tpu.memory_space<vmem>>, vector<128x256xbf16>
    %cst = arith.constant dense<0.000000e+00> : vector<8x256xf32>
    %3 = tpu.matmul %1, %2, %cst {dimension_numbers = #tpu.dot_dimension_numbers<[1], [0], [0], [1], [0, 0, 1, 1], [], []>} : vector<8x128xbf16>, vector<128x256xbf16>, vector<8x256xf32> -> vector<8x256xf32>
    %c0_3 = arith.constant 0 : index
    %c0_4 = arith.constant 0 : index
    %4 = vector.load %arg3[%c0_3, %c0_4] : memref<1x256xf32, #tpu.memory_space<vmem>>, vector<1x256xf32>
    %5 = vector.broadcast %4 : vector<1x256xf32> to vector<8x256xf32>
    %6 = arith.addf %3, %5 : vector<8x256xf32>
    %cst_5 = arith.constant 0.000000e+00 : f32
    %7 = vector.broadcast %cst_5 : f32 to vector<8x256xf32>
    %8 = arith.maximumf %6, %7 : vector<8x256xf32>
    %9 = arith.truncf %8 : vector<8x256xf32> to vector<8x256xbf16>
    %c0_6 = arith.constant 0 : index
    %c0_7 = arith.constant 0 : index
    %10 = vector.load %arg4[%c0_6, %c0_7] : memref<256x256xbf16, #tpu.memory_space<vmem>>, vector<256x256xbf16>
    %cst_8 = arith.constant dense<0.000000e+00> : vector<8x256xf32>
    %11 = tpu.matmul %9, %10, %cst_8 {dimension_numbers = #tpu.dot_dimension_numbers<[1], [0], [0], [1], [0, 0, 1, 1], [], []>} : vector<8x256xbf16>, vector<256x256xbf16>, vector<8x256xf32> -> vector<8x256xf32>
    %c0_9 = arith.constant 0 : index
    %c0_10 = arith.constant 0 : index
    %12 = vector.load %arg5[%c0_9, %c0_10] : memref<1x256xf32, #tpu.memory_space<vmem>>, vector<1x256xf32>
    %13 = vector.broadcast %12 : vector<1x256xf32> to vector<8x256xf32>
    %14 = arith.addf %11, %13 : vector<8x256xf32>
    %cst_11 = arith.constant 0.000000e+00 : f32
    %15 = vector.broadcast %cst_11 : f32 to vector<8x256xf32>
    %16 = arith.maximumf %14, %15 : vector<8x256xf32>
    %17 = arith.truncf %16 : vector<8x256xf32> to vector<8x256xbf16>
    %c0_12 = arith.constant 0 : index
    %c0_13 = arith.constant 0 : index
    %18 = vector.load %arg6[%c0_12, %c0_13] : memref<256x8xbf16, #tpu.memory_space<vmem>>, vector<256x8xbf16>
    %cst_14 = arith.constant dense<0.000000e+00> : vector<8x8xf32>
    %19 = tpu.matmul %17, %18, %cst_14 {dimension_numbers = #tpu.dot_dimension_numbers<[1], [0], [0], [1], [0, 0, 1, 1], [], []>} : vector<8x256xbf16>, vector<256x8xbf16>, vector<8x8xf32> -> vector<8x8xf32>
    %c0_15 = arith.constant 0 : index
    %c0_16 = arith.constant 0 : index
    %20 = vector.load %arg7[%c0_15, %c0_16] : memref<1x8xf32, #tpu.memory_space<vmem>>, vector<1x8xf32>
    %21 = vector.broadcast %20 : vector<1x8xf32> to vector<8x8xf32>
    %22 = arith.addf %19, %21 : vector<8x8xf32>
    %23 = math.tanh %22 : vector<8x8xf32>
    %cst_17 = arith.constant 1.000000e+00 : f32
    %24 = vector.broadcast %cst_17 : f32 to vector<8x8xf32>
    %25 = arith.addf %23, %24 : vector<8x8xf32>
    %cst_18 = arith.constant 6.000000e+00 : f32
    %26 = vector.broadcast %cst_18 : f32 to vector<8x8xf32>
    %27 = arith.mulf %26, %25 : vector<8x8xf32>
    %cst_19 = arith.constant -1.000000e+01 : f32
    %28 = vector.broadcast %cst_19 : f32 to vector<8x8xf32>
    %29 = arith.addf %28, %27 : vector<8x8xf32>
    %30 = math.exp %29 : vector<8x8xf32>
    %31 = tpu.iota {dimensions = array<i32: 1>} : vector<8x8xi32>
    %c4_i32 = arith.constant 4 : i32
    %32 = vector.broadcast %c4_i32 : i32 to vector<8x8xi32>
    %33 = arith.cmpi slt, %31, %32 : vector<8x8xi32>
    %34 = arith.select %33, %23, %30 : vector<8x8xi1>, vector<8x8xf32>
    %c0_20 = arith.constant 0 : index
    %c0_21 = arith.constant 0 : index
    %35 = vector.load %arg8[%c0_20, %c0_21] : memref<8x8xf32, #tpu.memory_space<vmem>>, vector<8x8xf32>
    tpu.vector_store %arg8[%c0_20, %c0_21], %34 {strides = array<i32>} : memref<8x8xf32, #tpu.memory_space<vmem>>, vector<8x8xf32>,
    return
  }
  func.func @transform_0(%arg0: i32) -> (i32, i32) {
    %c0_i32 = arith.constant 0 : i32
    %c0_i32_0 = arith.constant 0 : i32
    return %arg0, %c0_i32 : i32, i32
  }
  func.func @transform_1(%arg0: i32) -> (i32, i32) {
    %c0_i32 = arith.constant 0 : i32
    %c0_i32_0 = arith.constant 0 : i32
    %c0_i32_1 = arith.constant 0 : i32
    return %c0_i32, %c0_i32_0 : i32, i32
  }
  func.func @transform_2(%arg0: i32) -> (i32, i32) {
    %c0_i32 = arith.constant 0 : i32
    %c0_i32_0 = arith.constant 0 : i32
    %c0_i32_1 = arith.constant 0 : i32
    return %c0_i32, %c0_i32_0 : i32, i32
  }
  func.func @transform_3(%arg0: i32) -> (i32, i32) {
    %c0_i32 = arith.constant 0 : i32
    %c0_i32_0 = arith.constant 0 : i32
    %c0_i32_1 = arith.constant 0 : i32
    return %c0_i32, %c0_i32_0 : i32, i32
  }
  func.func @transform_4(%arg0: i32) -> (i32, i32) {
    %c0_i32 = arith.constant 0 : i32
    %c0_i32_0 = arith.constant 0 : i32
    %c0_i32_1 = arith.constant 0 : i32
    return %c0_i32, %c0_i32_0 : i32, i32
  }
  func.func @transform_5(%arg0: i32) -> (i32, i32) {
    %c0_i32 = arith.constant 0 : i32
    %c0_i32_0 = arith.constant 0 : i32
    %c0_i32_1 = arith.constant 0 : i32
    return %c0_i32, %c0_i32_0 : i32, i32
  }
  func.func @transform_6(%arg0: i32) -> (i32, i32) {
    %c0_i32 = arith.constant 0 : i32
    %c0_i32_0 = arith.constant 0 : i32
    %c0_i32_1 = arith.constant 0 : i32
    return %c0_i32, %c0_i32_0 : i32, i32
  }
  func.func @transform_7(%arg0: i32) -> (i32, i32) {
    %c0_i32 = arith.constant 0 : i32
    %c0_i32_0 = arith.constant 0 : i32
    return %arg0, %c0_i32 : i32, i32
  }
}

</mosaic_0001>

<bundles_post_ra>
// kernel: tpu_custom_call.1
= control target key start
LH: loop header
LB: loop body
LE: loop exit
PB: predicated region body
PF: predicated region fallthrough
CT: control target
= control target key end

     0   :  { %12 = vsyncpa [#allocation3], 0  ;;  %s1248_s0 = inlined_call_operand.vmem [shape: f32[8,128], index: 0, kind: input, shape index: {}]   ;;  %s1249_s1 = inlined_call_operand.vmem [shape: bf16[128,256], index: 1, kind: input, shape index: {}]   ;;  %s1250_s2 = inlined_call_operand.hbm [shape: f32[1,256], index: 2, kind: input, shape index: {}]   ;;  %s1251_s3 = inlined_call_operand.hbm [shape: bf16[256,256], index: 3, kind: input, shape index: {}]   ;;  %s1252_s4 = inlined_call_operand.vmem [shape: f32[1,256], index: 4, kind: input, shape index: {}]   ;;  %s1253_s5 = inlined_call_operand.vmem [shape: bf16[256,8], index: 5, kind: input, shape index: {}]   ;;  %s1254_s6 = inlined_call_operand.vmem [shape: f32[1,8], index: 6, kind: input, shape index: {}]   ;;  %s1255_s7 = inlined_call_operand.hbm [shape: f32[8,8], index: 7, kind: output, shape index: {}]  }
   0x1   :  { %13 = vsyncpa [#allocation6], 0 }
   0x2   :  { %14 = vsyncpa [#allocation4], 0  ;;  %s24_s26 = sshll.u32 %s1250_s2, 4  ;;  %s1041_s27 = smov [#allocation2]   ;;  %s25_s26 = int_to_ptr.hbm [resolvable:$true] %s24_s26 }
   0x3   :  { %s26_s28 = sshll.u32 %s1041_s27, 4  ;;  %s34_s8 = sshll.u32 %s1251_s3, 4  ;;  %s27_s28 = int_to_ptr.vmem [resolvable:$true] %s26_s28  ;;  %s35_s8 = int_to_ptr.hbm [resolvable:$true] %s34_s8 }
   0x4   :  { %29 = dma.hbm_to_vmem [thread:$0]  %s25_s26, 32, %s27_s28, [#allocation3]  }
   0x5   :  { %s1042_s9 = smov [#allocation5]   ;;  %s1043_s11 = smov 128  }
   0x6   :  { %s36_s10 = sshll.u32 %s1042_s9, 4  ;;  %s1044_s12 = smov 8   ;;  %s37_s10 = int_to_ptr.vmem [resolvable:$true] %s36_s10 }
   0x7   :  { %42 = dma.hbm_to_vmem [thread:$0]  %s35_s8, 4096, %s37_s10, [#allocation6], %s1043_s11, %s1043_s11, %s1044_s12  }
   0x8   :  { %1035 = dma.done.wait [#allocation3], 32  }
   0x9   :  { %1036 = vsyncadd [#allocation3], 4294967264 }
   0xa   :  { %1037 = dma.done.wait [#allocation6], 4096  }
   0xb   :  { %1038 = vsyncadd [#allocation6], 4294963200  ;;  %v691_v0 = vld [vmem:[%s1249_s1 + $0x70] sm:$0xf]  ;;  %v904_v1 = vld [vmem:[%s1249_s1 + $0x74] sm:$0xf0] }
   0xc   :  { %v903_v2 = vld [vmem:[%s1249_s1 + $0x74] sm:$0xf]  ;;  %v692_v3 = vor.u32 %v904_v1, %v691_v0  ;;  %v693_v4 = vld [vmem:[%s1249_s1 + $0x78] sm:$0xf0]  ;;  %v683_v5 = vld [vmem:[%s1249_s1 + $0x60] sm:$0xf] }
   0xd   :  { %v902_v6 = vld [vmem:[%s1249_s1 + $0x64] sm:$0xf0]  ;;  %v696_v7 = vor.u32 %v903_v2, %v693_v4  ;;  %v901_v8 = vld [vmem:[%s1249_s1 + $0x64] sm:$0xf]  ;;  %v685_v9 = vld [vmem:[%s1249_s1 + $0x68] sm:$0xf0] }
   0xe   :  { %161 = vmatpush.bf16.msra.mxu0 %v692_v3  ;;  %v684_v10 = vor.u32 %v902_v6, %v683_v5  ;;  %v688_v11 = vor.u32 %v901_v8, %v685_v9  ;;  %v675_v12 = vld [vmem:[%s1249_s1 + $0x50] sm:$0xf]  ;;  %v900_v13 = vld [vmem:[%s1249_s1 + $0x54] sm:$0xf0]  ;;  %v899_v14 = vld [vmem:[%s1249_s1 + $0x54] sm:$0xf] }
   0xf   :  { %174 = vmatpush.bf16.msra.mxu1 %v696_v7  ;;  %v677_v15 = vld [vmem:[%s1249_s1 + $0x58] sm:$0xf0]  ;;  %v676_v16 = vor.u32 %v900_v13, %v675_v12  ;;  %v667_v18 = vld [vmem:[%s1249_s1 + $0x40] sm:$0xf]  ;;  %v898_v19 = vld [vmem:[%s1249_s1 + $0x44] sm:$0xf0] }
  0x10   :  { %v680_v17 = vor.u32 %v899_v14, %v677_v15  ;;  %v897_v20 = vld [vmem:[%s1249_s1 + $0x44] sm:$0xf]  ;;  %v669_v21 = vld [vmem:[%s1249_s1 + $0x48] sm:$0xf0]  ;;  %v668_v22 = vor.u32 %v898_v19, %v667_v18  ;;  %v755_v23 = vld [vmem:[#allocation5 + $0x70] sm:$0xf] }
  0x11   :  { %v920_v24 = vld [vmem:[#allocation5 + $0x74] sm:$0xf0]  ;;  %v819_v25 = vld [vmem:[#allocation5 + $0xf0] sm:$0xf]  ;;  %v672_v26 = vor.u32 %v897_v20, %v669_v21  ;;  %v747_v34 = vld [vmem:[#allocation5 + $0x60] sm:$0xf] }
  0x12   :  { %162 = vmatpush.bf16.msra.mxu0 %v684_v10  ;;  %v659_v27 = vld [vmem:[%s1249_s1 + $0x30] sm:$0xf]  ;;  %v896_v28 = vld [vmem:[%s1249_s1 + $0x34] sm:$0xf0]  ;;  %v756_v29 = vor.u32 %v920_v24, %v755_v23  ;;  %v895_v31 = vld [vmem:[%s1249_s1 + $0x34] sm:$0xf] }
  0x13   :  { %175 = vmatpush.bf16.msra.mxu1 %v688_v11  ;;  %v936_v30 = vld [vmem:[#allocation5 + $0xf4] sm:$0xf0]  ;;  %v918_v35 = vld [vmem:[#allocation5 + $0x64] sm:$0xf0]  ;;  %v811_v36 = vld [vmem:[#allocation5 + $0xe0] sm:$0xf]  ;;  %v660_v38 = vor.u32 %v896_v28, %v659_v27 }
  0x14   :  { %v661_v32 = vld [vmem:[%s1249_s1 + $0x38] sm:$0xf0]  ;;  %v820_v33 = vor.u32 %v936_v30, %v819_v25  ;;  %389 = vmatpush.bf16.msra.mxu2 %v756_v29  ;;  %v934_v37 = vld [vmem:[#allocation5 + $0xe4] sm:$0xf0]  ;;  %v651_v39 = vld [vmem:[%s1249_s1 + $0x20] sm:$0xf]  ;;  %v748_v41 = vor.u32 %v918_v35, %v747_v34 }
  0x15   :  { %v894_v40 = vld [vmem:[%s1249_s1 + $0x24] sm:$0xf0]  ;;  %v812_v42 = vor.u32 %v934_v37, %v811_v36  ;;  %v664_v43 = vor.u32 %v895_v31, %v661_v32  ;;  %v893_v44 = vld [vmem:[%s1249_s1 + $0x24] sm:$0xf]  ;;  %v739_v45 = vld [vmem:[#allocation5 + $0x50] sm:$0xf] }
  0x16   :  { %163 = vmatpush.bf16.msra.mxu0 %v676_v16  ;;  %402 = vmatpush.bf16.msra.mxu3 %v820_v33  ;;  %v916_v46 = vld [vmem:[#allocation5 + $0x54] sm:$0xf0]  ;;  %v653_v47 = vld [vmem:[%s1249_s1 + $0x28] sm:$0xf0]  ;;  %v803_v48 = vld [vmem:[#allocation5 + $0xd0] sm:$0xf]  ;;  %v652_v51 = vor.u32 %v894_v40, %v651_v39 }
  0x17   :  { %176 = vmatpush.bf16.msra.mxu1 %v680_v17  ;;  %v932_v49 = vld [vmem:[#allocation5 + $0xd4] sm:$0xf0]  ;;  %v740_v50 = vor.u32 %v916_v46, %v739_v45  ;;  %v643_v52 = vld [vmem:[%s1249_s1 + $0x10] sm:$0xf]  ;;  %v731_v54 = vld [vmem:[#allocation5 + $0x40] sm:$0xf]  ;;  %v656_v56 = vor.u32 %v893_v44, %v653_v47 }
  0x18   :  { %390 = vmatpush.bf16.msra.mxu2 %v748_v41  ;;  %v804_v53 = vor.u32 %v932_v49, %v803_v48  ;;  %v914_v55 = vld [vmem:[#allocation5 + $0x44] sm:$0xf0]  ;;  %v892_v57 = vld [vmem:[%s1249_s1 + $0x14] sm:$0xf0]  ;;  %v795_v58 = vld [vmem:[#allocation5 + $0xc0] sm:$0xf] }
  0x19   :  { %v930_v59 = vld [vmem:[#allocation5 + $0xc4] sm:$0xf0]  ;;  %v891_v60 = vld [vmem:[%s1249_s1 + $0x14] sm:$0xf]  ;;  %v645_v61 = vld [vmem:[%s1249_s1 + $0x18] sm:$0xf0]  ;;  %v732_v63 = vor.u32 %v914_v55, %v731_v54  ;;  %v644_v0 = vor.u32 %v892_v57, %v643_v52 }
  0x1a   :  { %164 = vmatpush.bf16.msra.mxu0 %v668_v22  ;;  %403 = vmatpush.bf16.msra.mxu3 %v812_v42  ;;  %v635_v62 = vld [vmem:[%s1249_s1] sm:$0xf]  ;;  %v890_v1 = vld [vmem:[%s1249_s1 + $0x4] sm:$0xf0]  ;;  %v796_v2 = vor.u32 %v930_v59, %v795_v58  ;;  %v723_v3 = vld [vmem:[#allocation5 + $0x30] sm:$0xf]  ;;  %v648_v5 = vor.u32 %v891_v60, %v645_v61 }
  0x1b   :  { %177 = vmatpush.bf16.msra.mxu1 %v672_v26  ;;  %v912_v4 = vld [vmem:[#allocation5 + $0x34] sm:$0xf0]  ;;  %v889_v6 = vld [vmem:[%s1249_s1 + $0x4] sm:$0xf]  ;;  %v787_v7 = vld [vmem:[#allocation5 + $0xb0] sm:$0xf]  ;;  %v636_v16 = vor.u32 %v890_v1, %v635_v62 }
  0x1c   :  { %391 = vmatpush.bf16.msra.mxu2 %v740_v50  ;;  %v928_v8 = vld [vmem:[#allocation5 + $0xb4] sm:$0xf0]  ;;  %v637_v9 = vld [vmem:[%s1249_s1 + $0x8] sm:$0xf0]  ;;  %v919_v10 = vld [vmem:[#allocation5 + $0x74] sm:$0xf]  ;;  %v724_v15 = vor.u32 %v912_v4, %v723_v3 }
  0x1d   :  { %v757_v11 = vld [vmem:[#allocation5 + $0x78] sm:$0xf0]  ;;  %v935_v13 = vld [vmem:[#allocation5 + $0xf4] sm:$0xf]  ;;  %v788_v17 = vor.u32 %v928_v8, %v787_v7  ;;  %v715_v18 = vld [vmem:[#allocation5 + $0x20] sm:$0xf]  ;;  %v640_v20 = vor.u32 %v889_v6, %v637_v9 }
  0x1e   :  { %165 = vmatpush.bf16.msra.mxu0 %v660_v38  ;;  %404 = vmatpush.bf16.msra.mxu3 %v804_v53  ;;  %v57_v12 = vld [vmem:[%s1248_s0] sm:$0xff]  ;;  %v910_v19 = vld [vmem:[#allocation5 + $0x24] sm:$0xf0]  ;;  %v760_v21 = vor.u32 %v919_v10, %v757_v11  ;;  %v749_v26 = vld [vmem:[#allocation5 + $0x68] sm:$0xf0]  ;;  %s1045_s9 = smov [#allocation7]  }
  0x1f   :  { %178 = vmatpush.bf16.msra.mxu1 %v664_v43  ;;  %v821_v14 = vld [vmem:[#allocation5 + $0xf8] sm:$0xf0]  ;;  %v779_v22 = vld [vmem:[#allocation5 + $0xa0] sm:$0xf]  ;;  %v926_v23 = vld [vmem:[#allocation5 + $0xa4] sm:$0xf0]  ;;  %v58_v27 = vpack.c.bf16 %v57_v12, %v57_v12  ;;  %v716_v30 = vor.u32 %v910_v19, %v715_v18 }
  0x20   :  { %392 = vmatpush.bf16.msra.mxu2 %v732_v63  ;;  %v824_v24 = vor.u32 %v935_v13, %v821_v14  ;;  %v917_v25 = vld [vmem:[#allocation5 + $0x64] sm:$0xf]  ;;  %v813_v29 = vld [vmem:[#allocation5 + $0xe8] sm:$0xf0]  ;;  %v780_v31 = vor.u32 %v926_v23, %v779_v22  ;;  %v915_v34 = vld [vmem:[#allocation5 + $0x54] sm:$0xf] }
  0x21   :  { %v933_v28 = vld [vmem:[#allocation5 + $0xe4] sm:$0xf]  ;;  %v752_v32 = vor.u32 %v917_v25, %v749_v26  ;;  %v741_v35 = vld [vmem:[#allocation5 + $0x58] sm:$0xf0]  ;;  %v931_v36 = vld [vmem:[#allocation5 + $0xd4] sm:$0xf] }
  0x22   :  { %166 = vmatpush.bf16.msra.mxu0 %v652_v51  ;;  %405 = vmatpush.bf16.msra.mxu3 %v796_v2  ;;  %v816_v33 = vor.u32 %v933_v28, %v813_v29  ;;  %v805_v37 = vld [vmem:[#allocation5 + $0xd8] sm:$0xf0]  ;;  %v744_v38 = vor.u32 %v915_v34, %v741_v35  ;;  %v913_v40 = vld [vmem:[#allocation5 + $0x44] sm:$0xf]  ;;  %v733_v41 = vld [vmem:[#allocation5 + $0x48] sm:$0xf0] }
  0x23   :  { %179 = vmatpush.bf16.msra.mxu1 %v656_v56  ;;  %v808_v39 = vor.u32 %v931_v36, %v805_v37  ;;  %v929_v42 = vld [vmem:[#allocation5 + $0xc4] sm:$0xf]  ;;  %v797_v43 = vld [vmem:[#allocation5 + $0xc8] sm:$0xf0]  ;;  %v736_v44 = vor.u32 %v913_v40, %v733_v41  ;;  %v911_v46 = vld [vmem:[#allocation5 + $0x34] sm:$0xf] }
  0x24   :  { %393 = vmatpush.bf16.msra.mxu2 %v724_v15  ;;  %v800_v45 = vor.u32 %v929_v42, %v797_v43  ;;  %v725_v47 = vld [vmem:[#allocation5 + $0x38] sm:$0xf0]  ;;  %v927_v48 = vld [vmem:[#allocation5 + $0xb4] sm:$0xf]  ;;  %v909_v52 = vld [vmem:[#allocation5 + $0x24] sm:$0xf] }
  0x25   :  { %v789_v49 = vld [vmem:[#allocation5 + $0xb8] sm:$0xf0]  ;;  %v728_v50 = vor.u32 %v911_v46, %v725_v47  ;;  %v717_v53 = vld [vmem:[#allocation5 + $0x28] sm:$0xf0]  ;;  %v925_v54 = vld [vmem:[#allocation5 + $0xa4] sm:$0xf] }
  0x26   :  { %167 = vmatpush.bf16.msra.mxu0 %v644_v0  ;;  %406 = vmatpush.bf16.msra.mxu3 %v788_v17  ;;  %v792_v51 = vor.u32 %v927_v48, %v789_v49  ;;  %v781_v55 = vld [vmem:[#allocation5 + $0xa8] sm:$0xf0]  ;;  %v720_v56 = vor.u32 %v909_v52, %v717_v53  ;;  %v707_v58 = vld [vmem:[#allocation5 + $0x10] sm:$0xf]  ;;  %v908_v59 = vld [vmem:[#allocation5 + $0x14] sm:$0xf0] }
  0x27   :  { %180 = vmatpush.bf16.msra.mxu1 %v648_v5  ;;  %v784_v57 = vor.u32 %v925_v54, %v781_v55  ;;  %v771_v60 = vld [vmem:[#allocation5 + $0x90] sm:$0xf]  ;;  %v708_v61 = vor.u32 %v908_v59, %v707_v58  ;;  %v924_v62 = vld [vmem:[#allocation5 + $0x94] sm:$0xf0]  ;;  %v907_v63 = vld [vmem:[#allocation5 + $0x14] sm:$0xf] }
  0x28   :  { %394 = vmatpush.bf16.msra.mxu2 %v716_v30  ;;  %v709_v0 = vld [vmem:[#allocation5 + $0x18] sm:$0xf0]  ;;  %v772_v1 = vor.u32 %v924_v62, %v771_v60  ;;  %v923_v3 = vld [vmem:[#allocation5 + $0x94] sm:$0xf]  ;;  %v699_v6 = vld [vmem:[#allocation5] sm:$0xf] }
  0x29   :  { %v712_v2 = vor.u32 %v907_v63, %v709_v0  ;;  %v773_v4 = vld [vmem:[#allocation5 + $0x98] sm:$0xf0]  ;;  %v906_v7 = vld [vmem:[#allocation5 + $0x4] sm:$0xf0]  ;;  %v763_v8 = vld [vmem:[#allocation5 + $0x80] sm:$0xf] }
  0x2a   :  { %168 = vmatpush.bf16.msra.mxu0 %v636_v16  ;;  %407 = vmatpush.bf16.msra.mxu3 %v780_v31  ;;  %v776_v5 = vor.u32 %v923_v3, %v773_v4  ;;  %v700_v9 = vor.u32 %v906_v7, %v699_v6  ;;  %v922_v10 = vld [vmem:[#allocation5 + $0x84] sm:$0xf0]  ;;  %v905_v11 = vld [vmem:[#allocation5 + $0x4] sm:$0xf]  ;;  %v701_v12 = vld [vmem:[#allocation5 + $0x8] sm:$0xf0] }
  0x2b   :  { %181 = vmatpush.bf16.msra.mxu1 %v640_v20  ;;  %v764_v13 = vor.u32 %v922_v10, %v763_v8  ;;  %v704_v14 = vor.u32 %v905_v11, %v701_v12  ;;  %v921_v15 = vld [vmem:[#allocation5 + $0x84] sm:$0xf]  ;;  %v765_v16 = vld [vmem:[#allocation5 + $0x88] sm:$0xf0]  ;;  %v952_v18 = vld [vmem:[%s1253_s5 + $0x78] sm:$0xff]  ;;  %s620_s10 = sshll.u32 %s1045_s9, 4  ;;  %s621_s10 = int_to_ptr.vmem [resolvable:$true] %s620_s10 }
  0x2c   :  { %395 = vmatpush.bf16.msra.mxu2 %v708_v61  ;;  %v768_v17 = vor.u32 %v921_v15, %v765_v16  ;;  %v944_v19 = vld [vmem:[%s1253_s5 + $0x38] sm:$0xff]  ;;  %v951_v20 = vld [vmem:[%s1253_s5 + $0x70] sm:$0xff]  ;;  %v950_v22 = vld [vmem:[%s1253_s5 + $0x68] sm:$0xff]  ;;  %vm613_vm1 = vcmask 64512  }
  0x2d   :  { %169 = vmatmul.bf16.vlgmr.msra.gmra.mxu0 %v58_v27  ;;  %v942_v23 = vld [vmem:[%s1253_s5 + $0x28] sm:$0xff]  ;;  %v941_v25 = vld [vmem:[%s1253_s5 + $0x20] sm:$0xff]  ;;  %v948_v26 = vld [vmem:[%s1253_s5 + $0x58] sm:$0xff] }
  0x2e   :  { %415 = vmatpush.bf16.msrb.mxu0 %v760_v21  ;;  %182 = vmatmul.bf16.vlgmr.msra.gmra.mxu1 %v58_v27  ;;  %v943_v21 = vld [vmem:[%s1253_s5 + $0x30] sm:$0xff]  ;;  %v75_v27 = vld [vmem:[#allocation2] sm:$0x3]  ;;  %v940_v41 = vld [vmem:[%s1253_s5 + $0x18] sm:$0xff] }
  0x2f   :  { %428 = vmatpush.bf16.msrb.mxu1 %v824_v24  ;;  %408 = vmatpush.bf16.msra.mxu3 %v772_v1  ;;  %v949_v24 = vld [vmem:[%s1253_s5 + $0x60] sm:$0xff]  ;;  %v947_v28 = vld [vmem:[%s1253_s5 + $0x50] sm:$0xff]  ;;  %v77_v29 = vperm.slane %v75_v27, 0  ;;  %v78_v30 = vperm.slane %v75_v27, 1  ;;  %v946_v42 = vld [vmem:[%s1253_s5 + $0x48] sm:$0xff] }
  0x30   :  { %396 = vmatpush.bf16.msra.mxu2 %v700_v9  ;;  %v939_v43 = vld [vmem:[%s1253_s5 + $0x10] sm:$0xff]  ;;  %v937_v46 = vld [vmem:[%s1253_s5] sm:$0xff] }
  0x31   :  { %v223_v47 = vld [vmem:[%s1252_s4] sm:$0x3] }
  0x32   :  { %416 = vmatpush.bf16.msrb.mxu0 %v752_v32  ;;  %v226_v48 = vperm.slane %v223_v47, 1  ;;  %v225_v53 = vperm.slane %v223_v47, 0  ;;  %v958_v3 = vld [vmem:[%s1254_s6] ss:$0 sm:$0xff]  ;;  %s622_s6 = sshll.u32 %s1255_s7, 4  ;;  %s623_s6 = int_to_ptr.hbm [resolvable:$true] %s622_s6 }
  0x33   :  { %429 = vmatpush.bf16.msrb.mxu1 %v816_v33  ;;  %409 = vmatpush.bf16.msra.mxu3 %v764_v13  ;;  %v609_v13 = vlaneseq }
  0x34   :  { %577 = vmatpush.bf16.msrb.mxu2 %v944_v19 }
  0x35   :  { %v610_v15 = vand.u32 127, %v609_v13 }
  0x36   :  { %417 = vmatpush.bf16.msrb.mxu0 %v744_v38 }
  0x37   :  { %430 = vmatpush.bf16.msrb.mxu1 %v808_v39  ;;  %590 = vmatpush.bf16.msrb.mxu3 %v952_v18  ;;  %vm611_vm0 = vcmp.lt.s32.totalorder %v610_v15, 4 }
  0x38   :  { %578 = vmatpush.bf16.msrb.mxu2 %v943_v21 }
  0x3a   :  { %418 = vmatpush.bf16.msrb.mxu0 %v736_v44  ;;  %v945_v44 = vld [vmem:[%s1253_s5 + $0x40] sm:$0xff] }
  0x3b   :  { %431 = vmatpush.bf16.msrb.mxu1 %v800_v45  ;;  %591 = vmatpush.bf16.msrb.mxu3 %v951_v20  ;;  %v938_v45 = vld [vmem:[%s1253_s5 + $0x8] sm:$0xff] }
  0x3c   :  { %579 = vmatpush.bf16.msrb.mxu2 %v942_v23 }
  0x3e   :  { %419 = vmatpush.bf16.msrb.mxu0 %v728_v50 }
  0x3f   :  { %432 = vmatpush.bf16.msrb.mxu1 %v792_v51  ;;  %592 = vmatpush.bf16.msrb.mxu3 %v950_v22 }
  0x40   :  { %580 = vmatpush.bf16.msrb.mxu2 %v941_v25 }
  0x42   :  { %420 = vmatpush.bf16.msrb.mxu0 %v720_v56 }
  0x43   :  { %433 = vmatpush.bf16.msrb.mxu1 %v784_v57  ;;  %593 = vmatpush.bf16.msrb.mxu3 %v949_v24 }
  0x44   :  { %581 = vmatpush.bf16.msrb.mxu2 %v940_v41 }
  0x46   :  { %421 = vmatpush.bf16.msrb.mxu0 %v712_v2 }
  0x47   :  { %434 = vmatpush.bf16.msrb.mxu1 %v776_v5  ;;  %594 = vmatpush.bf16.msrb.mxu3 %v948_v26 }
  0x48   :  { %582 = vmatpush.bf16.msrb.mxu2 %v939_v43 }
  0x4a   :  { %422 = vmatpush.bf16.msrb.mxu0 %v704_v14 }
  0x4b   :  { %435 = vmatpush.bf16.msrb.mxu1 %v768_v17  ;;  %595 = vmatpush.bf16.msrb.mxu3 %v947_v28 }
  0x4c   :  { %583 = vmatpush.bf16.msrb.mxu2 %v938_v45 }
  0x4f   :  { %596 = vmatpush.bf16.msrb.mxu3 %v946_v42 }
  0x50   :  { %584 = vmatpush.bf16.msrb.mxu2 %v937_v46 }
  0x53   :  { %597 = vmatpush.bf16.msrb.mxu3 %v945_v44 }
  0xaa   :  { %v170_v31 = vpop.f32.mrf.mxu0 }
  0xab   :  { %v171_v32 = vadd.f32 %v170_v31, %v77_v29  ;;  %v183_v33 = vpop.f32.mrf.mxu1 }
  0xac   :  { %v184_v34 = vadd.f32 %v183_v33, %v78_v30 }
  0xad   :  { %v187_v35 = vmax.f32 %v171_v32, 0.0 }
  0xae   :  { %v188_v36 = vmax.f32 %v184_v34, 0.0 }
  0xaf   :  { %v189_v37 = vpack.c.bf16 %v187_v35, %v187_v35 }
  0xb0   :  { %v190_v38 = vpack.c.bf16 %v188_v36, %v188_v36 }
  0xb1   :  { %397 = vmatmul.bf16.vlgmr.msra.gmra.mxu2 %v189_v37  ;;  %423 = vmatmul.bf16.vlgmr.msrb.gmra.mxu0 %v189_v37 }
  0xb2   :  { %410 = vmatmul.bf16.vlgmr.msra.gmra.mxu3 %v190_v38  ;;  %436 = vmatmul.bf16.vlgmr.msrb.gmra.mxu1 %v190_v38  ;;  %v172_v39 = vpop.f32.mrf.mxu0 }
  0xb3   :  { %v185_v40 = vpop.f32.mrf.mxu1 }
 0x12e   :  { %v424_v49 = vpop.f32.mrf.mxu0 }
 0x12f   :  { %v425_v50 = vadd.f32 %v424_v49, %v226_v48  ;;  %v437_v51 = vpop.f32.mrf.mxu1 }
 0x131   :  { %v438_v52 = vadd.f32 %v437_v51, %v425_v50 }
 0x133   :  { %v442_v54 = vmax.f32 %v438_v52, 0.0 }
 0x134   :  { %v398_v55 = vpop.f32.mrf.mxu2 }
 0x135   :  { %v444_v56 = vpack.c.bf16 %v442_v54, %v442_v54  ;;  %v399_v57 = vadd.f32 %v398_v55, %v225_v53  ;;  %v411_v58 = vpop.f32.mrf.mxu3 }
 0x136   :  { %v426_v59 = vpop.f32.mrf.mxu0 }
 0x137   :  { %v412_v60 = vadd.f32 %v411_v58, %v399_v57  ;;  %v439_v61 = vpop.f32.mrf.mxu1  ;;  %598 = vmatmul.bf16.vlgmr.msrb.gmra.mxu3 %v444_v56 }
 0x139   :  { %v441_v62 = vmax.f32 %v412_v60, 0.0 }
 0x13b   :  { %v443_v63 = vpack.c.bf16 %v441_v62, %v441_v62 }
 0x13c   :  { %v400_v0 = vpop.f32.mrf.mxu2 }
 0x13d   :  { %v413_v1 = vpop.f32.mrf.mxu3  ;;  %585 = vmatmul.bf16.vlgmr.msrb.gmra.mxu2 %v443_v63 }
 0x1ba   :  { %v599_v2 = vpop.f32.mrf.mxu3 }
 0x1c0   :  { %v586_v4 = vpop.f32.mrf.mxu2 }
 0x1c1   :  { %v587_v5 = vadd.f32 %v958_v3, %v586_v4 }
 0x1c2   :  { %v601_v6 = vpop.f32.mrf.mxu3 }
 0x1c3   :  { %v600_v7 = vadd.f32 %v599_v2, %v587_v5 }
 0x1c5   :  { %959 = vtanh.f32 %v600_v7 }
 0x1c8   :  { %v588_v8 = vpop.f32.mrf.mxu2 }
 0x1cb   :  { %v960_v9 = vpop.eup %959 }
 0x1cc   :  { %v604_v10 = vadd.f32 1.0, %v960_v9 }
 0x1ce   :  { %v605_v11 = vmul.f32 6.0, %v604_v10 }
 0x1d0   :  { %v606_v12 = vadd.f32 -10.0, %v605_v11 }
 0x1d2   :  { %v607_v14 = vmul.f32 1.442695, %v606_v12 }
 0x1d4   :  { %961 = vpow2.f32 %v607_v14 }
 0x1da   :  { %v962_v16 = vpop.eup %961 }
 0x1db   :  { %v612_v17 = vsel %vm611_vm0, %v960_v9, %v962_v16 }
 0x1dc   :  { %614 = vst.msk [vmem:[#allocation7] sm:$0xff] %vm613_vm1, %v612_v17 }
 0x1dd   :  { %625 = dma.vmem_to_hbm [thread:$0]  %s621_s10, 128, %s623_s6, [#allocation4]  }
 0x1de   :  { %1039 = dma.done.wait [#allocation4], 128  }
 0x1df   :  { %1040 = vsyncadd [#allocation4], 4294967168 }
 0x1e0   :  { %630 = vsyncpa [#allocation3], 1 }
 0x1e1   :  { %631 = vsyncpa [#allocation6], 1 }
 0x1e2   :  { %632 = vsyncpa [#allocation4], 1 }

</bundles_post_ra>
